<compile_context>
chip_gen: v5e
topology: v5e:2x2
jax: 0.10.0
libtpu: 0.0.40
codegen_flags: <defaults>
</compile_context>

<pallas_src>
from functools import partial

import jax
import jax.numpy as jnp
from jax.experimental import pallas as pl
from jax.experimental.pallas import tpu as pltpu

HIDDEN = 40


def feature_kernel(x_ref, w1_ref, b1_ref, w2_ref, b2_ref, w3_ref, b3_ref, o_ref,
                   *, bf16_matmul=False):
    # x tile: (1, tn) -- batch on the lane axis.
    x = x_ref[...]

    # Layer 1 (in_features = 1): a K=1 matmul is ~1% MXU utilization, so do the
    # outer product on the VPU via broadcasting:  (40,1) * (1,tn) -> (40,tn).
    h1 = jnp.maximum(w1_ref[...] * x + b1_ref[...], 0.0)

    # Layer 2 (40x40): the only real contraction -> MXU, lane-dense (tn) result.
    if bf16_matmul:
        # Single-pass bf16 MXU (up to ~3x on the matmul); relaxes accuracy.
        h2 = jnp.dot(w2_ref[...].astype(jnp.bfloat16), h1.astype(jnp.bfloat16),
                     preferred_element_type=jnp.float32)
    else:
        h2 = jnp.dot(w2_ref[...], h1, preferred_element_type=jnp.float32)
    h2 = jnp.maximum(h2 + b2_ref[...], 0.0)                       # (40, tn)

    # Layer 3 (out_features = 1): N=1 matmul wastes 127/128 result lanes, so do
    # a VPU multiply and a small sublane (hidden-channel) reduction.  This is a
    # reduction over HIDDEN, never over the batch/lane axis (tail-safe).
    o = jnp.sum(w3_ref[...] * h2, axis=0, keepdims=True)          # (1, tn)
    o_ref[...] = (o + b3_ref[0, 0]).astype(o_ref.dtype)


def _pick_tile_n(n, requested):
    """Large tile to amortize per-step overhead; shrink so the grid has >= 2
    steps when possible (keeps both v7x TensorCores fed via the parallel axis)."""
    if requested is not None:
        assert requested % 128 == 0, "tile_n must be a multiple of 128"
        return requested
    tile_n = 8192
    while tile_n > 128 and pl.cdiv(n, tile_n) < 2:
        tile_n //= 2
    return tile_n


def feature_forward(x, params, *, tile_n=None, bf16_matmul=False):
    """x: (N, 1) float32 -> (N, 1) float32 (matches PyTorch Feature.forward)."""
    N = x.shape[0]
    tile_n = _pick_tile_n(N, tile_n)

    # Batch-on-lane view; NO padding copy -- Pallas masks the ragged tail block.
    x_t = x.reshape(1, N)
    grid_n = pl.cdiv(N, tile_n)

    w1, b1, w2, b2, w3, b3 = (
        params["w1"], params["b1"], params["w2"],
        params["b2"], params["w3"], params["b3"],
    )

    # Grid-invariant blocks: same block index every step -> loaded once,
    # kept resident in VMEM (no per-step re-DMA).
    const = lambda a: pl.BlockSpec(a.shape, lambda i: (0, 0))

    out_t = pl.pallas_call(
        partial(feature_kernel, bf16_matmul=bf16_matmul),
        out_shape=jax.ShapeDtypeStruct((1, N), jnp.float32),
        grid_spec=pltpu.PrefetchScalarGridSpec(
            num_scalar_prefetch=0,
            grid=(grid_n,),
            in_specs=[
                pl.BlockSpec((1, tile_n), lambda i: (0, i)),          # x tile
                const(w1),                                            # (40, 1)
                const(b1),                                            # (40, 1)
                const(w2),                                            # (40, 40)
                const(b2),                                            # (40, 1)
                const(w3),                                            # (40, 1)
                pl.BlockSpec(memory_space=pltpu.MemorySpace.SMEM),    # b3 (1, 1)
            ],
            out_specs=pl.BlockSpec((1, tile_n), lambda i: (0, i)),    # lane-dense out
        ),
        compiler_params=pltpu.CompilerParams(
            dimension_semantics=("parallel",),   # batch axis shards across TCs
        ),
    )(x_t, w1, b1, w2, b2, w3, b3)

    return out_t.reshape(N, 1)


def init_params(key):
    """nn.Linear-style init, stored in the kernel's transposed layout:
       w1: (40, 1)  (= layer1.weight)          b1: (40, 1)
       w2: (40, 40) (= layer2.weight, out x in) b2: (40, 1)
       w3: (40, 1)  (= layer3.weight.T)        b3: (1, 1)"""
    ks = jax.random.split(key, 6)

    def linear(kw, kb, fan_in, fan_out):
        bound = 1.0 / jnp.sqrt(fan_in)
        w = jax.random.uniform(kw, (fan_out, fan_in), jnp.float32, -bound, bound)
        b = jax.random.uniform(kb, (fan_out,), jnp.float32, -bound, bound)
        return w, b

    w1, b1 = linear(ks[0], ks[1], 1, HIDDEN)
    w2, b2 = linear(ks[2], ks[3], HIDDEN, HIDDEN)
    w3, b3 = linear(ks[4], ks[5], HIDDEN, 1)
    return {
        "w1": w1,                        # (40, 1)
        "b1": b1.reshape(HIDDEN, 1),
        "w2": w2,                        # (40, 40)
        "b2": b2.reshape(HIDDEN, 1),
        "w3": w3.T,                      # (40, 1)
        "b3": b3.reshape(1, 1),
    }


def reference_forward(x, p):
    hi = jax.lax.Precision.HIGHEST
    h1 = jnp.maximum(jnp.dot(x, p["w1"].T, precision=hi) + p["b1"].T, 0.0)
    h2 = jnp.maximum(jnp.dot(h1, p["w2"].T, precision=hi) + p["b2"].T, 0.0)
    return jnp.dot(h2, p["w3"], precision=hi) + p["b3"]


if __name__ == "__main__":
    key = jax.random.PRNGKey(0)
    kx, kp = jax.random.split(key)

    # N=1000 exercises the no-pad ragged-tail path: auto tile_n=512, grid=2,
    # second block has 488 valid lanes (masked tail writeback).
    N = 1000
    x = jax.random.normal(kx, (N, 1), jnp.float32)
    params = init_params(kp)

    out = feature_forward(x, params)
    out = jax.block_until_ready(out)

    ref = reference_forward(x, params)
    assert out.shape == (N, 1)
    assert jnp.allclose(out, ref, atol=1e-5, rtol=1e-5), float(
        jnp.max(jnp.abs(out - ref))
    )

    print("KERNEL_OK")
</pallas_src>

<mosaic_0001>
module attributes {stable_mosaic.version = 11 : i64} {
  func.func @feature_kernel(%arg0: i32, %arg1: memref<1x512xf32, #tpu.memory_space<vmem>>, %arg2: memref<40x1xf32, #tpu.memory_space<vmem>>, %arg3: memref<40x1xf32, #tpu.memory_space<vmem>>, %arg4: memref<40x40xf32, #tpu.memory_space<vmem>>, %arg5: memref<40x1xf32, #tpu.memory_space<vmem>>, %arg6: memref<40x1xf32, #tpu.memory_space<vmem>>, %arg7: memref<1x1xf32, #tpu.memory_space<smem>>, %arg8: memref<1x512xf32, #tpu.memory_space<vmem>>) attributes {dimension_semantics = [#tpu.dimension_semantics<parallel>], iteration_bounds = array<i64: 2>, scalar_prefetch = 0 : i64, scratch_operands = 0 : i64, tpu.core_type = #tpu.core_type<tc>, window_params = [{transform_indices = @transform_0, window_bounds = array<i64: 1, 512>}, {pipeline_mode = #tpu.pipeline_mode<synchronous>, transform_indices = @transform_1, window_bounds = array<i64: 40, 1>}, {pipeline_mode = #tpu.pipeline_mode<synchronous>, transform_indices = @transform_2, window_bounds = array<i64: 40, 1>}, {pipeline_mode = #tpu.pipeline_mode<synchronous>, transform_indices = @transform_3, window_bounds = array<i64: 40, 40>}, {pipeline_mode = #tpu.pipeline_mode<synchronous>, transform_indices = @transform_4, window_bounds = array<i64: 40, 1>}, {pipeline_mode = #tpu.pipeline_mode<synchronous>, transform_indices = @transform_5, window_bounds = array<i64: 40, 1>}, {transform_indices = @transform_6, window_bounds = array<i64: 1, 1>}, {transform_indices = @transform_7, window_bounds = array<i64: 1, 512>}]} {
    %c0 = arith.constant 0 : index
    %c0_0 = arith.constant 0 : index
    %0 = vector.load %arg1[%c0, %c0_0] : memref<1x512xf32, #tpu.memory_space<vmem>>, vector<1x512xf32>
    %c0_1 = arith.constant 0 : index
    %c0_2 = arith.constant 0 : index
    %1 = vector.load %arg2[%c0_1, %c0_2] : memref<40x1xf32, #tpu.memory_space<vmem>>, vector<40x1xf32>
    %2 = vector.broadcast %1 : vector<40x1xf32> to vector<40x512xf32>
    %3 = vector.broadcast %0 : vector<1x512xf32> to vector<40x512xf32>
    %4 = arith.mulf %2, %3 : vector<40x512xf32>
    %c0_3 = arith.constant 0 : index
    %c0_4 = arith.constant 0 : index
    %5 = vector.load %arg3[%c0_3, %c0_4] : memref<40x1xf32, #tpu.memory_space<vmem>>, vector<40x1xf32>
    %6 = vector.broadcast %5 : vector<40x1xf32> to vector<40x512xf32>
    %7 = arith.addf %4, %6 : vector<40x512xf32>
    %cst = arith.constant 0.000000e+00 : f32
    %8 = vector.broadcast %cst : f32 to vector<40x512xf32>
    %9 = arith.maximumf %7, %8 : vector<40x512xf32>
    %c0_5 = arith.constant 0 : index
    %c0_6 = arith.constant 0 : index
    %10 = vector.load %arg4[%c0_5, %c0_6] : memref<40x40xf32, #tpu.memory_space<vmem>>, vector<40x40xf32>
    %cst_7 = arith.constant dense<0.000000e+00> : vector<40x512xf32>
    %11 = tpu.matmul %10, %9, %cst_7 {dimension_numbers = #tpu.dot_dimension_numbers<[1], [0], [0], [1], [0, 0, 1, 1], [], []>} : vector<40x40xf32>, vector<40x512xf32>, vector<40x512xf32> -> vector<40x512xf32>
    %c0_8 = arith.constant 0 : index
    %c0_9 = arith.constant 0 : index
    %12 = vector.load %arg5[%c0_8, %c0_9] : memref<40x1xf32, #tpu.memory_space<vmem>>, vector<40x1xf32>
    %13 = vector.broadcast %12 : vector<40x1xf32> to vector<40x512xf32>
    %14 = arith.addf %11, %13 : vector<40x512xf32>
    %cst_10 = arith.constant 0.000000e+00 : f32
    %15 = vector.broadcast %cst_10 : f32 to vector<40x512xf32>
    %16 = arith.maximumf %14, %15 : vector<40x512xf32>
    %c0_11 = arith.constant 0 : index
    %c0_12 = arith.constant 0 : index
    %17 = vector.load %arg6[%c0_11, %c0_12] : memref<40x1xf32, #tpu.memory_space<vmem>>, vector<40x1xf32>
    %18 = vector.broadcast %17 : vector<40x1xf32> to vector<40x512xf32>
    %19 = arith.mulf %18, %16 : vector<40x512xf32>
    %cst_13 = arith.constant dense<0.000000e+00> : vector<512xf32>
    %20 = vector.multi_reduction <add>, %19, %cst_13 [0] : vector<40x512xf32> to vector<512xf32>
    %21 = vector.shape_cast %20 : vector<512xf32> to vector<1x512xf32>
    %c0_14 = arith.constant 0 : index
    %c0_15 = arith.constant 0 : index
    %22 = memref.load %arg7[%c0_14, %c0_15] : memref<1x1xf32, #tpu.memory_space<smem>>
    %23 = vector.broadcast %22 : f32 to vector<1x512xf32>
    %24 = arith.addf %21, %23 : vector<1x512xf32>
    %c0_16 = arith.constant 0 : index
    %c0_17 = arith.constant 0 : index
    %25 = vector.load %arg8[%c0_16, %c0_17] : memref<1x512xf32, #tpu.memory_space<vmem>>, vector<1x512xf32>
    tpu.vector_store %arg8[%c0_16, %c0_17], %24 {strides = array<i32>} : memref<1x512xf32, #tpu.memory_space<vmem>>, vector<1x512xf32>,
    return
  }
  func.func @transform_0(%arg0: i32) -> (i32, i32) {
    %c0_i32 = arith.constant 0 : i32
    %c0_i32_0 = arith.constant 0 : i32
    return %c0_i32, %arg0 : i32, i32
  }
  func.func @transform_1(%arg0: i32) -> (i32, i32) {
    %c0_i32 = arith.constant 0 : i32
    %c0_i32_0 = arith.constant 0 : i32
    %c0_i32_1 = arith.constant 0 : i32
    return %c0_i32, %c0_i32_0 : i32, i32
  }
  func.func @transform_2(%arg0: i32) -> (i32, i32) {
    %c0_i32 = arith.constant 0 : i32
    %c0_i32_0 = arith.constant 0 : i32
    %c0_i32_1 = arith.constant 0 : i32
    return %c0_i32, %c0_i32_0 : i32, i32
  }
  func.func @transform_3(%arg0: i32) -> (i32, i32) {
    %c0_i32 = arith.constant 0 : i32
    %c0_i32_0 = arith.constant 0 : i32
    %c0_i32_1 = arith.constant 0 : i32
    return %c0_i32, %c0_i32_0 : i32, i32
  }
  func.func @transform_4(%arg0: i32) -> (i32, i32) {
    %c0_i32 = arith.constant 0 : i32
    %c0_i32_0 = arith.constant 0 : i32
    %c0_i32_1 = arith.constant 0 : i32
    return %c0_i32, %c0_i32_0 : i32, i32
  }
  func.func @transform_5(%arg0: i32) -> (i32, i32) {
    %c0_i32 = arith.constant 0 : i32
    %c0_i32_0 = arith.constant 0 : i32
    %c0_i32_1 = arith.constant 0 : i32
    return %c0_i32, %c0_i32_0 : i32, i32
  }
  func.func @transform_6(%arg0: i32) -> (i32, i32) {
    %c0_i32 = arith.constant 0 : i32
    %c0_i32_0 = arith.constant 0 : i32
    %c0_i32_1 = arith.constant 0 : i32
    return %c0_i32, %c0_i32_0 : i32, i32
  }
  func.func @transform_7(%arg0: i32) -> (i32, i32) {
    %c0_i32 = arith.constant 0 : i32
    %c0_i32_0 = arith.constant 0 : i32
    return %c0_i32, %arg0 : i32, i32
  }
}

</mosaic_0001>

<bundles_post_ra>
// kernel: tpu_custom_call.1
= control target key start
LH: loop header
LB: loop body
LE: loop exit
PB: predicated region body
PF: predicated region fallthrough
CT: control target
= control target key end

     0   :  { %s1202_s0 = inlined_call_operand.vmem [shape: f32[1,1000], index: 0, kind: input, shape index: {}]   ;;  %s1203_s1 = inlined_call_operand.vmem [shape: f32[40,1], index: 1, kind: input, shape index: {}]   ;;  %s1204_s2 = inlined_call_operand.vmem [shape: f32[40,1], index: 2, kind: input, shape index: {}]   ;;  %s1205_s3 = inlined_call_operand.vmem [shape: f32[40,40], index: 3, kind: input, shape index: {}]   ;;  %s1206_s4 = inlined_call_operand.vmem [shape: f32[40,1], index: 4, kind: input, shape index: {}]   ;;  %s1207_s5 = inlined_call_operand.vmem [shape: f32[40,1], index: 5, kind: input, shape index: {}]   ;;  %s1208_s6 = inlined_call_operand.<no memory space> [shape: f32[1,1], index: 6, kind: input, shape index: {}]   ;;  %s1209_s7 = inlined_call_operand.hbm [shape: f32[1,1000], index: 7, kind: output, shape index: {}]  }
   0x1   :  { %12 = sst [smem:[#allocation2]] %s1208_s6 }
   0x2   :  { %13 = vsyncpa [#allocation4], 0 }
   0x3   :  { %15 = vsyncpa [#allocation4 + $0x1], 0  ;;  %s975_s26 = smov 0   ;;  %s977_s27 = smov 0  }
   0x4   :  { %s979_s28 = smov 0   ;;  %s981_s29 = smov 0  }
   0x5 LB: > { %s793_s6 = sadd.s32 4294967295, %s929_s29   ;;  %s794_s30 = sadd.s32 4294967294, %s929_s29   ;;  %s929_s29 = sphi %s981_s29, %s1215_s29   ;;  %s925_s28 = sphi %s979_s28, %s1214_s28   ;;  %s921_s27 = sphi %s977_s27, %s1213_s27   ;;  %s917_s26 = sphi %s975_s26, %s1212_s26  }
   0x6   : > { %s998_s8 = sadd.s32 1, %s929_s29   ;;  %s180_s9 = sadd.s32 1, %s925_s28 }
   0x7   : > { %s177_s10 = ssub.s32 %s929_s29, %s998_s8  ;;  %p190_p0 = scmp.ne.s32.totalorder %s925_s28, %s921_s27 }
   0x8   : > { %p178_p1 = scmp.eq.s32.totalorder %s177_s10, 0  ;;  %p191_p2 = scmp.eq.s32.totalorder %s793_s6, 1 }
   0x9   : > { %p196_p3 = scmp.ne.s32.totalorder %s921_s27, %s917_s26  ;;  %p197_p4 = scmp.eq.s32.totalorder %s794_s30, 1 }
   0xa   : > { %s1010_s11 = scalar_select %p178_p1, %s925_s28, %s180_s9  }
   0xb   : > { %p1012_p5 = por %p191_p2, %p190_p0  ;;  %p1016_p6 = por %p197_p4, %p196_p3 }
   0xc   : > { %p797_p7 = scmp.ge.s32.totalorder %s929_s29, 1  ;;  %p241_p8 = scmp.lt.s32.totalorder %s929_s29, 3 }
   0xe   : > { %p242_p9 = pnand %p797_p7, %p241_p8 }
   0xf   : > { %s1084_s24 = sshll.u32 (!%p242_p9), %s793_s6, 2  ;;  %s697_s23 = sld [smem:[#allocation2]] (!%p242_p9) }
  0x10   : > { %245 = sbr.rel (%p242_p9) target bundleno = 363 (0x16b), region = 48  ;;  %p273_p10 = scmp.lt.s32.totalorder (!%p242_p9), %s1084_s24, 7 }
  0x11   : > { %s733_s6 = scalar_lea.hbm (!%p242_p9), %s1209_s7, %s1084_s24  ;;  %s887_s21 = scalar_lea.hbm (!%p242_p9), %s1209_s7, 8 }
  0x12   : > { %s737_s16 = sshll.u32 (!%p242_p9), %s733_s6, 4  ;;  %s738_s16 = int_to_ptr.hbm [resolvable:$true] %s737_s16 }
  0x13   : > { %s881_s17 = sshra.s32 (!%p242_p9), %s738_s16, 4  ;;  %s882_s17 = int_to_ptr.hbm [resolvable:$true] %s881_s17 }
  0x14   : > { %s883_s18 = scalar_lea.hbm (!%p242_p9), %s882_s17, 4  ;;  %p888_p0 = scmp.lt.s32.totalorder (!%p242_p9), %s882_s17, %s1209_s7 }
  0x15   : > { %v341_v0 = vld [vmem:[%s1204_s2 + $0x18] sm:$0xff]  ;;  %v342_v1 = vld [vmem:[%s1204_s2 + $0x20] sm:$0xff]  ;;  %v931_v3 = vmov 0   ;;  %v280_v4 = vld [vmem:[%s1203_s1 + $0x8] sm:$0xff]  ;;  %s274_s25 = scalar_select %p273_p10, %s1084_s24, 7  ;;  %vm443_vm0 = vcmask 326656  }
  0x16   : > { %v283_v2 = vld [vmem:[%s1203_s1 + $0x20] sm:$0xff]  ;;  %866 = vset.pattern.permute.xlu2 %v931_v3  ;;  %865 = vset.pattern.permute.xlu1 %v931_v3  ;;  %v282_v5 = vld [vmem:[%s1203_s1 + $0x18] sm:$0xff]  ;;  %v281_v6 = vld [vmem:[%s1203_s1 + $0x10] sm:$0xff]  ;;  %vm710_vm1 = vcmask 1040384   ;;  %vm712_vm2 = vcmask 1042434   ;;  %vm714_vm3 = vcmask 1041408   ;;  %p884_p11 = scmp.ne.s32.totalorder %s882_s17, %s883_s18  ;;  %p889_p1 = scmp.lt.s32.totalorder %s887_s21, %s883_s18 }
  0x17   : > { %864 = vset.pattern.permute.xlu0 %v931_v3  ;;  %360 = vperm.xlu2 %866, %v341_v0   ;;  %v339_v7 = vld [vmem:[%s1204_s2 + $0x8] sm:$0xff]  ;;  %v340_v8 = vld [vmem:[%s1204_s2 + $0x10] sm:$0xff]  ;;  %v279_v9 = vld [vmem:[%s1203_s1] sm:$0xff]  ;;  %s275_s10 = scalar_lea.vmem %s1202_s0, %s274_s25  ;;  %s269_s25 = sand.u32 1, %s921_s27  }
  0x18   : > { %365 = vperm.xlu1 %865, %v342_v1   ;;  %306 = vperm.xlu0 %864, %v283_v2   ;;  %v414_v10 = vld [vmem:[%s1206_s4 + $0x8] sm:$0xff]  ;;  %v338_v11 = vld [vmem:[%s1204_s2] sm:$0xff]  ;;  %v415_v14 = vld [vmem:[%s1206_s4 + $0x10] sm:$0xff]  ;;  %s798_s30 = sshll.u32 %s269_s25, 2  ;;  %s723_s24 = scalar_lea.sflag [#allocation4], %s269_s25 }
  0x19   : > { %v413_v12 = vld [vmem:[%s1206_s4] sm:$0xff]  ;;  %v416_v15 = vld [vmem:[%s1206_s4 + $0x18] sm:$0xff]  ;;  %v609_v16 = vld [vmem:[%s1207_s5 + $0x10] sm:$0xff]  ;;  %s271_s14 = scalar_lea.vmem [#allocation3], %s798_s30  ;;  %p885_p12 = pnand %p884_p11, %p1012_p5 }
  0x1a   : > { %v607_v13 = vld [vmem:[%s1207_s5] sm:$0xff]  ;;  %v608_v17 = vld [vmem:[%s1207_s5 + $0x8] sm:$0xff]  ;;  %v610_v19 = vld [vmem:[%s1207_s5 + $0x18] sm:$0xff]  ;;  %s735_s15 = sshll.u32 %s271_s14, 4  ;;  %p890_p2 = por %p889_p1, %p888_p0  ;;  %s736_s15 = int_to_ptr.vmem [resolvable:$true] %s735_s15 }
  0x1b   : > { %v417_v18 = vld [vmem:[%s1206_s4 + $0x20] sm:$0xff]  ;;  %p886_p13 = pneg %p885_p12 }
  0x1c   : > { %v611_v20 = vld [vmem:[%s1207_s5 + $0x20] sm:$0xff] }
  0x1d   : > { %v278_v21 = vld [vmem:[%s275_s10] sm:$0xf]  ;;  %p891_p3 = pnand %p890_p2, %p886_p13 }
  0x1e   : > { %v1091_v23 = vperm.slane %v278_v21, 0  ;;  %v1093_v24 = vperm.slane %v278_v21, 1  ;;  %v1095_v25 = vperm.slane %v278_v21, 2  ;;  %v1097_v26 = vperm.slane %v278_v21, 3 }
  0x1f   : > { %291 = vperm.xlu2 %866, %v280_v4  }
  0x20   : > { %301 = vperm.xlu0 %864, %v282_v5   ;;  %296 = vperm.xlu1 %865, %v281_v6  }
  0x27   : > { %350 = vperm.xlu2 %866, %v339_v7  }
  0x28   : > { %355 = vperm.xlu0 %864, %v340_v8   ;;  %286 = vperm.xlu1 %865, %v279_v9  }
  0x2f   : > { %425 = vperm.xlu2 %866, %v414_v10  }
  0x30   : > { %345 = vperm.xlu0 %864, %v338_v11   ;;  %420 = vperm.xlu1 %865, %v413_v12  }
  0x37   : > { %614 = vperm.xlu2 %866, %v607_v13  }
  0x38   : > { %430 = vperm.xlu0 %864, %v415_v14   ;;  %435 = vperm.xlu1 %865, %v416_v15  }
  0x3f   : > { %624 = vperm.xlu2 %866, %v609_v16  }
  0x40   : > { %619 = vperm.xlu0 %864, %v608_v17   ;;  %440 = vperm.xlu1 %865, %v417_v18  }
  0x48   : > { %629 = vperm.xlu0 %864, %v610_v19   ;;  %634 = vperm.xlu1 %865, %v611_v20  }
  0x71   : > { %v361_v22 = vpop.permute.xlu2 %360 }
  0x79   : > { %v292_v37 = vpop.permute.xlu2 %291 }
  0x7a   : > { %v322_v52 = vmul.f32 %v1091_v23, %v292_v37  ;;  %v323_v53 = vmul.f32 %v1093_v24, %v292_v37  ;;  %v324_v59 = vmul.f32 %v1095_v25, %v292_v37  ;;  %v325_v60 = vmul.f32 %v1097_v26, %v292_v37 }
  0x81   : > { %v351_v61 = vpop.permute.xlu2 %350 }
  0x82   : > { %v372_v2 = vadd.f32 %v351_v61, %v322_v52  ;;  %v373_v3 = vadd.f32 %v351_v61, %v323_v53  ;;  %v374_v8 = vadd.f32 %v351_v61, %v324_v59  ;;  %v375_v9 = vadd.f32 %v351_v61, %v325_v60 }
  0x84   : > { %v392_v15 = vmax.f32 %v372_v2, 0.0  ;;  %v393_v16 = vmax.f32 %v373_v3, 0.0  ;;  %v394_v17 = vmax.f32 %v374_v8, 0.0  ;;  %v395_v18 = vmax.f32 %v375_v9, 0.0 }
  0x8a   : > { %v366_v27 = vpop.permute.xlu1 %365  ;;  %v307_v28 = vpop.permute.xlu0 %306 }
  0x8b   : > { %v334_v29 = vmul.f32 %v1091_v23, %v307_v28  ;;  %v335_v30 = vmul.f32 %v1093_v24, %v307_v28  ;;  %v336_v31 = vmul.f32 %v1095_v25, %v307_v28  ;;  %v337_v32 = vmul.f32 %v1097_v26, %v307_v28 }
  0x8d   : > { %v384_v33 = vadd.f32 %v366_v27, %v334_v29  ;;  %v385_v34 = vadd.f32 %v366_v27, %v335_v30  ;;  %v386_v35 = vadd.f32 %v366_v27, %v336_v31  ;;  %v387_v36 = vadd.f32 %v366_v27, %v337_v32 }
  0x8f   : > { %v404_v38 = vmax.f32 %v384_v33, 0.0  ;;  %v405_v39 = vmax.f32 %v385_v34, 0.0  ;;  %v406_v40 = vmax.f32 %v386_v35, 0.0  ;;  %v407_v41 = vmax.f32 %v387_v36, 0.0  ;;  %v412_v36 = vld [vmem:[%s1205_s3 + $0x20] sm:$0xff] }
  0x91   : > { %470 = vmatpush.msra.mxu0 %v404_v38  ;;  %502 = vmatpush.msra.mxu1 %v405_v39 }
  0x92   : > { %534 = vmatpush.msra.mxu2 %v406_v40  ;;  %566 = vmatpush.msra.mxu3 %v407_v41  ;;  %v302_v42 = vpop.permute.xlu0 %301  ;;  %v297_v43 = vpop.permute.xlu1 %296 }
  0x93   : > { %v330_v44 = vmul.f32 %v1091_v23, %v302_v42  ;;  %v331_v45 = vmul.f32 %v1093_v24, %v302_v42  ;;  %v332_v46 = vmul.f32 %v1095_v25, %v302_v42  ;;  %v333_v47 = vmul.f32 %v1097_v26, %v302_v42 }
  0x94   : > { %v326_v58 = vmul.f32 %v1091_v23, %v297_v43  ;;  %v327_v62 = vmul.f32 %v1093_v24, %v297_v43  ;;  %v328_v63 = vmul.f32 %v1095_v25, %v297_v43  ;;  %v329_v0 = vmul.f32 %v1097_v26, %v297_v43 }
  0x95   : > { %v380_v48 = vadd.f32 %v361_v22, %v330_v44  ;;  %v381_v49 = vadd.f32 %v361_v22, %v331_v45  ;;  %v382_v50 = vadd.f32 %v361_v22, %v332_v46  ;;  %v383_v51 = vadd.f32 %v361_v22, %v333_v47  ;;  %v426_v44 = vpop.permute.xlu2 %425 }
  0x97   : > { %v400_v54 = vmax.f32 %v380_v48, 0.0  ;;  %v401_v55 = vmax.f32 %v381_v49, 0.0  ;;  %v402_v56 = vmax.f32 %v382_v50, 0.0  ;;  %v403_v57 = vmax.f32 %v383_v51, 0.0 }
  0x99   : > { %471 = vmatpush.msra.mxu0 %v400_v54  ;;  %503 = vmatpush.msra.mxu1 %v401_v55 }
  0x9a   : > { %535 = vmatpush.msra.mxu2 %v402_v56  ;;  %567 = vmatpush.msra.mxu3 %v403_v57  ;;  %v356_v1 = vpop.permute.xlu0 %355  ;;  %v287_v10 = vpop.permute.xlu1 %286 }
  0x9b   : > { %v376_v4 = vadd.f32 %v356_v1, %v326_v58  ;;  %v377_v5 = vadd.f32 %v356_v1, %v327_v62  ;;  %v378_v6 = vadd.f32 %v356_v1, %v328_v63  ;;  %v379_v7 = vadd.f32 %v356_v1, %v329_v0 }
  0x9c   : > { %v318_v19 = vmul.f32 %v1091_v23, %v287_v10  ;;  %v319_v20 = vmul.f32 %v1093_v24, %v287_v10  ;;  %v320_v21 = vmul.f32 %v1095_v25, %v287_v10  ;;  %v321_v22 = vmul.f32 %v1097_v26, %v287_v10  ;;  %v408_v23 = vld [vmem:[%s1205_s3] sm:$0xff]  ;;  %v409_v24 = vld [vmem:[%s1205_s3 + $0x8] sm:$0xff]  ;;  %v410_v25 = vld [vmem:[%s1205_s3 + $0x10] sm:$0xff] }
  0x9d   : > { %v396_v11 = vmax.f32 %v376_v4, 0.0  ;;  %v397_v12 = vmax.f32 %v377_v5, 0.0  ;;  %v398_v13 = vmax.f32 %v378_v6, 0.0  ;;  %v399_v14 = vmax.f32 %v379_v7, 0.0  ;;  %v411_v26 = vld [vmem:[%s1205_s3 + $0x18] sm:$0xff]  ;;  %v1154_v51 = vpop.permute.xlu2 %614 }
  0x9f   : > { %472 = vmatpush.msra.mxu0 %v396_v11  ;;  %504 = vmatpush.msra.mxu1 %v397_v12 }
  0xa0   : > { %536 = vmatpush.msra.mxu2 %v398_v13  ;;  %568 = vmatpush.msra.mxu3 %v399_v14 }
  0xa1   : > { %473 = vmatpush.msra.mxu0 %v392_v15  ;;  %505 = vmatpush.msra.mxu1 %v393_v16 }
  0xa2   : > { %537 = vmatpush.msra.mxu2 %v394_v17  ;;  %569 = vmatpush.msra.mxu3 %v395_v18  ;;  %v346_v27 = vpop.permute.xlu0 %345  ;;  %v421_v39 = vpop.permute.xlu1 %420 }
  0xa3   : > { %v368_v28 = vadd.f32 %v346_v27, %v318_v19  ;;  %v369_v29 = vadd.f32 %v346_v27, %v319_v20  ;;  %v370_v30 = vadd.f32 %v346_v27, %v320_v21  ;;  %v371_v31 = vadd.f32 %v346_v27, %v321_v22 }
  0xa5   : > { %v388_v32 = vmax.f32 %v368_v28, 0.0  ;;  %v389_v33 = vmax.f32 %v369_v29, 0.0  ;;  %v390_v34 = vmax.f32 %v370_v30, 0.0  ;;  %v391_v35 = vmax.f32 %v371_v31, 0.0  ;;  %v625_v18 = vpop.permute.xlu2 %624 }
  0xa7   : > { %474 = vmatpush.msra.mxu0 %v388_v32  ;;  %506 = vmatpush.msra.mxu1 %v389_v33 }
  0xa8   : > { %538 = vmatpush.msra.mxu2 %v390_v34  ;;  %570 = vmatpush.msra.mxu3 %v391_v35 }
  0xa9   : > { %800 = vmatmul.msk.f32.vlgmr.msra.gmra.mxu0 %vm443_vm0, %v408_v23  ;;  %805 = vmatmul.msk.f32.vlgmr.msra.gmra.mxu1 %vm443_vm0, %v408_v23 }
  0xaa   : > { %810 = vmatmul.msk.f32.vlgmr.msra.gmra.mxu2 %vm443_vm0, %v408_v23  ;;  %815 = vmatmul.msk.f32.vlgmr.msra.gmra.mxu3 %vm443_vm0, %v408_v23  ;;  %v431_v45 = vpop.permute.xlu0 %430  ;;  %v436_v46 = vpop.permute.xlu1 %435 }
  0xb1   : > { %801 = vmatmul.msk.f32.gmra.mxu0 %vm443_vm0, %v409_v24  ;;  %806 = vmatmul.msk.f32.gmra.mxu1 %vm443_vm0, %v409_v24 }
  0xb2   : > { %811 = vmatmul.msk.f32.gmra.mxu2 %vm443_vm0, %v409_v24  ;;  %816 = vmatmul.msk.f32.gmra.mxu3 %vm443_vm0, %v409_v24  ;;  %v620_v52 = vpop.permute.xlu0 %619  ;;  %v1156_v5 = vpop.permute.xlu1 %440 }
  0xb9   : > { %802 = vmatmul.msk.f32.gmra.mxu0 %vm443_vm0, %v410_v25  ;;  %807 = vmatmul.msk.f32.gmra.mxu1 %vm443_vm0, %v410_v25 }
  0xba   : > { %812 = vmatmul.msk.f32.gmra.mxu2 %vm443_vm0, %v410_v25  ;;  %817 = vmatmul.msk.f32.gmra.mxu3 %vm443_vm0, %v410_v25  ;;  %v630_v19 = vpop.permute.xlu0 %629 }
  0xc1   : > { %803 = vmatmul.msk.f32.gmra.mxu0 %vm443_vm0, %v411_v26  ;;  %808 = vmatmul.msk.f32.gmra.mxu1 %vm443_vm0, %v411_v26 }
  0xc2   : > { %813 = vmatmul.msk.f32.gmra.mxu2 %vm443_vm0, %v411_v26  ;;  %818 = vmatmul.msk.f32.gmra.mxu3 %vm443_vm0, %v411_v26 }
  0xc9   : > { %804 = vmatmul.msk.f32.gmra.mxu0 %vm443_vm0, %v412_v36  ;;  %809 = vmatmul.msk.f32.gmra.mxu1 %vm443_vm0, %v412_v36 }
  0xca   : > { %814 = vmatmul.msk.f32.gmra.mxu2 %vm443_vm0, %v412_v36  ;;  %819 = vmatmul.msk.f32.gmra.mxu3 %vm443_vm0, %v412_v36 }
 0x126   : > { %v476_v37 = vpop.f32.mrf.mxu0  ;;  %v508_v38 = vpop.f32.mrf.mxu1 }
 0x127   : > { %v477_v55 = vadd.f32 %v476_v37, %v421_v39  ;;  %v509_v56 = vadd.f32 %v508_v38, %v421_v39 }
 0x129   : > { %v587_v1 = vmax.f32 %v477_v55, 0.0  ;;  %v588_v2 = vmax.f32 %v509_v56, 0.0 }
 0x12b   : > { %v637_v14 = vmul.f32 %v1154_v51, %v587_v1  ;;  %v638_v15 = vmul.f32 %v1154_v51, %v588_v2 }
 0x12d   : > { %v540_v40 = vpop.f32.mrf.mxu2  ;;  %v572_v41 = vpop.f32.mrf.mxu3 }
 0x12e   : > { %v479_v42 = vpop.f32.mrf.mxu0  ;;  %v511_v43 = vpop.f32.mrf.mxu1  ;;  %v541_v8 = vadd.f32 %v540_v40, %v421_v39  ;;  %v573_v9 = vadd.f32 %v572_v41, %v421_v39 }
 0x12f   : > { %v480_v53 = vadd.f32 %v479_v42, %v426_v44  ;;  %v512_v54 = vadd.f32 %v511_v43, %v426_v44 }
 0x130   : > { %v589_v28 = vmax.f32 %v541_v8, 0.0  ;;  %v590_v29 = vmax.f32 %v573_v9, 0.0 }
 0x131   : > { %v591_v61 = vmax.f32 %v480_v53, 0.0  ;;  %v592_v62 = vmax.f32 %v512_v54, 0.0 }
 0x133   : > { %v641_v12 = vmul.f32 %v620_v52, %v591_v61  ;;  %v642_v13 = vmul.f32 %v620_v52, %v592_v62 }
 0x135   : > { %v543_v47 = vpop.f32.mrf.mxu2  ;;  %v575_v48 = vpop.f32.mrf.mxu3  ;;  %v657_v34 = vadd.f32 %v641_v12, %v637_v14  ;;  %v667_v35 = vadd.f32 %v642_v13, %v638_v15 }
 0x136   : > { %v482_v49 = vpop.f32.mrf.mxu0  ;;  %v514_v50 = vpop.f32.mrf.mxu1  ;;  %v544_v6 = vadd.f32 %v543_v47, %v426_v44  ;;  %v576_v7 = vadd.f32 %v575_v48, %v426_v44 }
 0x137   : > { %v483_v57 = vadd.f32 %v482_v49, %v431_v45  ;;  %v515_v58 = vadd.f32 %v514_v50, %v431_v45  ;;  %v635_v49 = vpop.permute.xlu1 %634  ;;  %v639_v50 = vmul.f32 %v1154_v51, %v589_v28 }
 0x138   : > { %v593_v20 = vmax.f32 %v544_v6, 0.0  ;;  %v594_v21 = vmax.f32 %v576_v7, 0.0 }
 0x139   : > { %v595_v10 = vmax.f32 %v483_v57, 0.0  ;;  %v596_v11 = vmax.f32 %v515_v58, 0.0 }
 0x13a   : > { %v643_v40 = vmul.f32 %v620_v52, %v593_v20  ;;  %v644_v41 = vmul.f32 %v620_v52, %v594_v21 }
 0x13b   : > { %v645_v30 = vmul.f32 %v625_v18, %v595_v10  ;;  %v646_v31 = vmul.f32 %v625_v18, %v596_v11 }
 0x13c   : > { %v677_v52 = vadd.f32 %v643_v40, %v639_v50 }
 0x13d   : > { %v546_v59 = vpop.f32.mrf.mxu2  ;;  %v578_v60 = vpop.f32.mrf.mxu3  ;;  %v658_v44 = vadd.f32 %v657_v34, %v645_v30 }
 0x13e   : > { %v485_v63 = vpop.f32.mrf.mxu0  ;;  %v517_v0 = vpop.f32.mrf.mxu1  ;;  %v547_v22 = vadd.f32 %v546_v59, %v431_v45  ;;  %v579_v27 = vadd.f32 %v578_v60, %v431_v45  ;;  %v668_v45 = vadd.f32 %v667_v35, %v646_v31  ;;  %v698_v35 = vstv %s697_s23 }
 0x13f   : > { %v486_v3 = vadd.f32 %v485_v63, %v436_v46  ;;  %v518_v4 = vadd.f32 %v517_v0, %v436_v46 }
 0x140   : > { %v597_v42 = vmax.f32 %v547_v22, 0.0  ;;  %v598_v43 = vmax.f32 %v579_v27, 0.0 }
 0x141   : > { %v599_v16 = vmax.f32 %v486_v3, 0.0  ;;  %v600_v17 = vmax.f32 %v518_v4, 0.0 }
 0x142   : > { %v647_v59 = vmul.f32 %v625_v18, %v597_v42  ;;  %v648_v60 = vmul.f32 %v625_v18, %v598_v43 }
 0x143   : > { %v649_v36 = vmul.f32 %v630_v19, %v599_v16  ;;  %v650_v37 = vmul.f32 %v630_v19, %v600_v17 }
 0x144   : > { %v678_v8 = vadd.f32 %v677_v52, %v647_v59 }
 0x145   : > { %v549_v32 = vpop.f32.mrf.mxu2  ;;  %v581_v33 = vpop.f32.mrf.mxu3  ;;  %v659_v55 = vadd.f32 %v658_v44, %v649_v36  ;;  %v669_v56 = vadd.f32 %v668_v45, %v650_v37 }
 0x146   : > { %v550_v23 = vadd.f32 %v549_v32, %v436_v46  ;;  %v582_v24 = vadd.f32 %v581_v33, %v436_v46  ;;  %v488_v25 = vpop.f32.mrf.mxu0  ;;  %v520_v26 = vpop.f32.mrf.mxu1  ;;  %v640_v46 = vmul.f32 %v1154_v51, %v590_v29 }
 0x147   : > { %v489_v38 = vadd.f32 %v488_v25, %v1156_v5  ;;  %v521_v39 = vadd.f32 %v520_v26, %v1156_v5 }
 0x148   : > { %v601_v53 = vmax.f32 %v550_v23, 0.0  ;;  %v602_v54 = vmax.f32 %v582_v24, 0.0  ;;  %v687_v61 = vadd.f32 %v644_v41, %v640_v46  ;;  %v717_v41 = vlaneseq }
 0x149   : > { %v603_v47 = vmax.f32 %v489_v38, 0.0  ;;  %v604_v48 = vmax.f32 %v521_v39, 0.0 }
 0x14a   : > { %v651_v2 = vmul.f32 %v630_v19, %v601_v53  ;;  %v652_v3 = vmul.f32 %v630_v19, %v602_v54  ;;  %v688_v9 = vadd.f32 %v687_v61, %v648_v60  ;;  %vm719_vm4 = vcmp.lt.s32.totalorder %v717_v41, 512 }
 0x14b   : > { %v653_v57 = vmul.f32 %v635_v49, %v603_v47  ;;  %v654_v58 = vmul.f32 %v635_v49, %v604_v48 }
 0x14c   : > { %v679_v14 = vadd.f32 %v678_v8, %v651_v2  ;;  %v689_v15 = vadd.f32 %v688_v9, %v652_v3 }
 0x14d   : > { %v660_v62 = vadd.f32 %v659_v55, %v653_v57  ;;  %v670_v63 = vadd.f32 %v669_v56, %v654_v58  ;;  %v552_v0 = vpop.f32.mrf.mxu2  ;;  %v584_v1 = vpop.f32.mrf.mxu3 }
 0x14e   : > { %v553_v4 = vadd.f32 %v552_v0, %v1156_v5  ;;  %v585_v51 = vadd.f32 %v584_v1, %v1156_v5 }
 0x14f   : > { %v661_v6 = vrot.slane %v660_v62, 4  ;;  %v671_v7 = vrot.slane %v670_v63, 4 }
 0x150   : > { %v605_v10 = vmax.f32 %v553_v4, 0.0  ;;  %v606_v11 = vmax.f32 %v585_v51, 0.0 }
 0x151   : > { %v662_v12 = vadd.f32 %v661_v6, %v660_v62  ;;  %v672_v13 = vadd.f32 %v671_v7, %v670_v63 }
 0x152   : > { %v655_v16 = vmul.f32 %v635_v49, %v605_v10  ;;  %v656_v17 = vmul.f32 %v635_v49, %v606_v11 }
 0x153   : > { %v673_v18 = vrot.slane %v672_v13, 2  ;;  %v663_v19 = vrot.slane %v662_v12, 2 }
 0x154   : > { %v680_v20 = vadd.f32 %v679_v14, %v655_v16  ;;  %v690_v21 = vadd.f32 %v689_v15, %v656_v17 }
 0x155   : > { %v674_v5 = vadd.f32 %v673_v18, %v672_v13  ;;  %v664_v29 = vadd.f32 %v663_v19, %v662_v12 }
 0x156   : > { %v681_v22 = vrot.slane %v680_v20, 4  ;;  %v691_v27 = vrot.slane %v690_v21, 4 }
 0x157   : > { %v675_v28 = vrot.slane %v674_v5, 1  ;;  %v665_v23 = vrot.slane %v664_v29, 1 }
 0x158   : > { %v682_v30 = vadd.f32 %v681_v22, %v680_v20  ;;  %v692_v31 = vadd.f32 %v691_v27, %v690_v21 }
 0x159   : > { %v676_v32 = vadd.f32 %v675_v28, %v674_v5  ;;  %v666_v38 = vadd.f32 %v665_v23, %v664_v29 }
 0x15a   : > { %v683_v33 = vrot.slane %v682_v30, 2  ;;  %v693_v34 = vrot.slane %v692_v31, 2 }
 0x15b   : > { %v700_v37 = vadd.f32 %v698_v35, %v676_v32  ;;  %v699_v45 = vadd.f32 %v698_v35, %v666_v38 }
 0x15c   : > { %v684_v24 = vadd.f32 %v683_v33, %v682_v30  ;;  %v694_v25 = vadd.f32 %v693_v34, %v692_v31 }
 0x15d   : > { %v707_v44 = vrot.slane %v700_v37, 7 }
 0x15e   : > { %v685_v26 = vrot.slane %v684_v24, 1  ;;  %v695_v36 = vrot.slane %v694_v25, 1 }
 0x15f   : > { %v711_v49 = vsel %vm710_vm1, %v699_v45, %v707_v44 }
 0x160   : > { %v686_v39 = vadd.f32 %v685_v26, %v684_v24  ;;  %v696_v40 = vadd.f32 %v695_v36, %v694_v25 }
 0x162   : > { %v701_v42 = vadd.f32 %v698_v35, %v686_v39  ;;  %v702_v43 = vadd.f32 %v698_v35, %v696_v40 }
 0x164   : > { %v708_v47 = vrot.slane %v701_v42, 6  ;;  %v709_v48 = vrot.slane %v702_v43, 5 }
 0x166   : > { %v713_v50 = vsel %vm712_vm2, %v708_v47, %v709_v48 }
 0x167   : > { %v715_v46 = vsel %vm714_vm3, %v711_v49, %v713_v50 }
 0x168   : > { %721 = vst.msk [vmem:[%s271_s14] sm:$0xf] %vm719_vm4, %v715_v46 }
 0x169   : > { %894 = shalt.err (!%p891_p3)
}
 0x16a   : > { %824 = dma.vmem_to_hbm [thread:$0]  (%p1012_p5), %s736_s15, 64, %s738_s16, %s723_s24  }
 0x16b PF: > { %p830_p4 = scmp.ge.s32.totalorder %s929_s29, 2  ;;  %s749_s25 = sand.u32 1, %s917_s26  }
 0x16c   : > { %s750_s30 = scalar_lea.sflag [#allocation4], %s749_s25 }
 0x16d   : > { %p827_p7 = pnand %p830_p4, %p1016_p6 }
 0x16f   : > { %p828_p8 = pneg %p827_p7 }
 0x171   : > { %912 = dma.done.wait (%p828_p8), %s750_s30, 64  }
 0x172   : > { %914 = vsyncadd (%p828_p8), %s750_s30, 4294967232  ;;  %p18_p9 = scmp.ge.s32.totalorder %s998_s8, 4   ;;  %s1212_s26 = smov %s921_s27 }
 0x173   : > { %s1213_s27 = smov %s925_s28  ;;  %s1214_s28 = smov %s1010_s11 }
 0x174   : > { %s1215_s29 = smov %s998_s8  ;;  %20 = sbr.rel (!%p18_p9) target bundleno = 5 (0x5), region = 83 }
 0x179   :  { %756 = vsyncpa [#allocation4], 1 }
 0x17a   :  { %758 = vsyncpa [#allocation4 + $0x1], 1 }

</bundles_post_ra>
